<compile_context>
chip_gen: v5e
topology: v5e:2x2
jax: 0.10.0
libtpu: 0.0.40
codegen_flags: <defaults>
</compile_context>

<pallas_src>
import functools

import numpy as np
import jax
import jax.numpy as jnp
from jax.experimental import pallas as pl
from jax.experimental.pallas import tpu as pltpu


# ----------------------------------------------------------------------------
# In-kernel helpers
# ----------------------------------------------------------------------------

def _layer_norm(s, g, b):
    # LayerNorm(eps=1e-5), biased variance — matches nn.LayerNorm
    mean = jnp.mean(s, axis=-1, keepdims=True)
    var = jnp.mean(jnp.square(s - mean), axis=-1, keepdims=True)
    return (s - mean) * jax.lax.rsqrt(var + 1e-5) * g + b


# ----------------------------------------------------------------------------
# Fused kernel: QKV -> sparse edge attention -> norm1 -> FFN -> norm2
# ----------------------------------------------------------------------------

def _fused_block_kernel(x_ref, wq_ref, bq_ref, wk_ref, bk_ref, wv_ref, bv_ref,
                        ssrc_ref, ssrcT_ref, stgt_ref, p_ref, pT_ref,
                        g1_ref, beta1_ref, w1_ref, b1_ref, w2_ref, b2_ref,
                        g2_ref, beta2_ref, o_ref, *, head_dim):
    f32 = jnp.float32
    bf16 = jnp.bfloat16

    x = x_ref[...]                                   # (N, D) f32
    xb = x.astype(bf16)

    # --- QKV projection: three (D, D) bf16 MXU matmuls, f32 accumulation ---
    q = jnp.dot(xb, wq_ref[...], preferred_element_type=f32) + bq_ref[...]
    k = jnp.dot(xb, wk_ref[...], preferred_element_type=f32) + bk_ref[...]
    v = jnp.dot(xb, wv_ref[...], preferred_element_type=f32) + bv_ref[...]

    # one-hot gather/scatter matrices: 0/1, exact in bf16; promote so the
    # gathers themselves are exact f32 selections
    ssrc = ssrc_ref[...].astype(f32)                 # (E, N)  rows one-hot at src
    ssrcT = ssrcT_ref[...].astype(f32)               # (N, E)
    stgt = stgt_ref[...].astype(f32)                 # (E, N)  rows one-hot at tgt
    P = p_ref[...].astype(f32)                       # (D, H)  head-pooling matrix
    PT = pT_ref[...].astype(f32)                     # (H, D)

    # gathers as one-hot matmuls
    qe = jnp.dot(ssrc, q, preferred_element_type=f32)    # q[src]  (E, D)
    ke = jnp.dot(stgt, k, preferred_element_type=f32)    # k[tgt]  (E, D)
    ve = jnp.dot(stgt, v, preferred_element_type=f32)    # v[tgt]  (E, D)

    # per-head dot products: sum over head_dim via the pooling matrix
    inv_sqrt = 1.0 / (head_dim ** 0.5)
    scores = jnp.dot(qe * ke, P, preferred_element_type=f32) * inv_sqrt   # (E, H)

    # softmax over ALL edges (dim=0), per head — exactly as the PyTorch code
    m = jnp.max(scores, axis=0, keepdims=True)
    ex = jnp.exp(scores - m)
    denom = jnp.sum(ex, axis=0, keepdims=True)
    soft = ex * pl.reciprocal(denom, approx=True)                          # (E, H)

    # index_add_ to src nodes, then gather back at src  (weights_head[src_mapped])
    node_w = jnp.dot(ssrcT, soft, preferred_element_type=f32)              # (N, H)
    edge_w = jnp.dot(ssrc, node_w, preferred_element_type=f32)             # (E, H)

    # broadcast per-head weight over head_dim, weight v[tgt], scatter-add to src
    ew = jnp.dot(edge_w, PT, preferred_element_type=f32)                   # (E, D)
    attn = jnp.dot(ssrcT, ew * ve, preferred_element_type=f32)             # (N, D)

    # dropout(p=0.1) in eval mode is the identity.

    # --- residual + norm1 ---
    h1 = _layer_norm(x + attn, g1_ref[...], beta1_ref[...])

    # --- FFN (bf16 MXU matmuls, f32 accumulation) ---
    h = jnp.dot(h1.astype(bf16), w1_ref[...], preferred_element_type=f32) + b1_ref[...]
    h = jnp.maximum(h, 0.0)
    ffn = jnp.dot(h.astype(bf16), w2_ref[...], preferred_element_type=f32) + b2_ref[...]

    # --- residual + norm2 ---
    o_ref[...] = _layer_norm(h1 + ffn, g2_ref[...], beta2_ref[...])


# Fallback path of the PyTorch module when no edges survive filtering:
#   x = norm1(x); ffn_out = ffn(x); return norm2(x + ffn_out)
def _ffn_only_kernel(x_ref, g1_ref, beta1_ref, w1_ref, b1_ref, w2_ref, b2_ref,
                     g2_ref, beta2_ref, o_ref):
    f32 = jnp.float32
    bf16 = jnp.bfloat16
    xn = _layer_norm(x_ref[...], g1_ref[...], beta1_ref[...])
    h = jnp.dot(xn.astype(bf16), w1_ref[...], preferred_element_type=f32) + b1_ref[...]
    h = jnp.maximum(h, 0.0)
    ffn = jnp.dot(h.astype(bf16), w2_ref[...], preferred_element_type=f32) + b2_ref[...]
    o_ref[...] = _layer_norm(xn + ffn, g2_ref[...], beta2_ref[...])


# ----------------------------------------------------------------------------
# Wrapper
# ----------------------------------------------------------------------------

_VMEM_SPEC = pl.BlockSpec(memory_space=pltpu.MemorySpace.VMEM)


def transformer_block_forward(x, node_indices, adj_matrix, params, num_heads):
    batch, num_nodes, input_size = x.shape
    if batch != 1:
        raise ValueError("Sparse attention currently assumes batch_size=1")
    head_dim = input_size // num_heads

    # --- host-side edge filtering / remapping (vectorized numpy, mirrors the
    #     PyTorch dict logic: original index -> position in node_indices) ---
    adj = np.asarray(adj_matrix)
    node_idx = np.asarray(node_indices)
    src_all, tgt_all = np.nonzero(adj)
    lut = np.full(adj.shape[0], -1, dtype=np.int64)
    lut[node_idx] = np.arange(node_idx.shape[0])
    keep = (lut[src_all] >= 0) & (lut[tgt_all] >= 0)
    src_mapped = lut[src_all[keep]].astype(np.int32)
    tgt_mapped = lut[tgt_all[keep]].astype(np.int32)
    num_edges = src_mapped.shape[0]

    x2d = x[0]                                        # (N, D) f32

    if num_edges == 0:
        # FFN-only fallback branch (same semantics as the PyTorch module).
        args = (x2d, params["g1"], params["beta1"], params["w1"], params["b1"],
                params["w2"], params["b2"], params["g2"], params["beta2"])
        out2d = pl.pallas_call(
            _ffn_only_kernel,
            out_shape=jax.ShapeDtypeStruct((num_nodes, input_size), jnp.float32),
            in_specs=[_VMEM_SPEC] * len(args),
            out_specs=_VMEM_SPEC,
        )(*args)
        return out2d[None], src_mapped, tgt_mapped

    # one-hot gather/scatter matrices (0/1 -> exact in bf16)
    eye = np.eye(num_nodes, dtype=np.float32)
    s_src = jnp.asarray(eye[src_mapped], dtype=jnp.bfloat16)      # (E, N)
    s_tgt = jnp.asarray(eye[tgt_mapped], dtype=jnp.bfloat16)      # (E, N)
    s_srcT = jnp.asarray(eye[src_mapped].T, dtype=jnp.bfloat16)   # (N, E)

    # head-pooling matrix (block identity over head_dim)
    pool = np.zeros((input_size, num_heads), dtype=np.float32)
    for h in range(num_heads):
        pool[h * head_dim:(h + 1) * head_dim, h] = 1.0
    P = jnp.asarray(pool, dtype=jnp.bfloat16)                     # (D, H)
    PT = jnp.asarray(pool.T, dtype=jnp.bfloat16)                  # (H, D)

    # split the fused QKV weight host-side so the kernel needs no lane slicing
    D = input_size
    w_q = params["w_qkv"][:, :D]
    w_k = params["w_qkv"][:, D:2 * D]
    w_v = params["w_qkv"][:, 2 * D:]
    b_q = params["b_qkv"][:, :D]
    b_k = params["b_qkv"][:, D:2 * D]
    b_v = params["b_qkv"][:, 2 * D:]

    args = (x2d, w_q, b_q, w_k, b_k, w_v, b_v,
            s_src, s_srcT, s_tgt, P, PT,
            params["g1"], params["beta1"],
            params["w1"], params["b1"], params["w2"], params["b2"],
            params["g2"], params["beta2"])

    out2d = pl.pallas_call(
        functools.partial(_fused_block_kernel, head_dim=head_dim),
        out_shape=jax.ShapeDtypeStruct((num_nodes, input_size), jnp.float32),
        in_specs=[_VMEM_SPEC] * len(args),
        out_specs=_VMEM_SPEC,
    )(*args)

    return out2d[None], src_mapped, tgt_mapped        # (1, N, D)


# ----------------------------------------------------------------------------
# Pure-JAX reference (same math and same precision choices) for verification
# ----------------------------------------------------------------------------

def reference_forward(x, src_mapped, tgt_mapped, params, num_heads):
    f32 = jnp.float32
    bf16 = jnp.bfloat16
    x2d = x[0]
    num_nodes, D = x2d.shape
    head_dim = D // num_heads

    def ln(s, g, b):
        mean = jnp.mean(s, axis=-1, keepdims=True)
        var = jnp.mean(jnp.square(s - mean), axis=-1, keepdims=True)
        return (s - mean) * jax.lax.rsqrt(var + 1e-5) * g + b

    def ffn(h):
        a = jnp.maximum(
            jnp.dot(h.astype(bf16), params["w1"], preferred_element_type=f32)
            + params["b1"], 0.0)
        return (jnp.dot(a.astype(bf16), params["w2"], preferred_element_type=f32)
                + params["b2"])

    if src_mapped.shape[0] == 0:
        xn = ln(x2d, params["g1"], params["beta1"])
        return ln(xn + ffn(xn), params["g2"], params["beta2"])[None]

    qkv = (jnp.dot(x2d.astype(bf16), params["w_qkv"], preferred_element_type=f32)
           + params["b_qkv"])
    q, k, v = jnp.split(qkv, 3, axis=-1)
    q = q.reshape(num_nodes, num_heads, head_dim)
    k = k.reshape(num_nodes, num_heads, head_dim)
    v = v.reshape(num_nodes, num_heads, head_dim)

    qe = q[src_mapped]
    ke = k[tgt_mapped]
    ve = v[tgt_mapped]
    scores = (qe * ke).sum(-1) / (head_dim ** 0.5)            # (E, H)
    soft = jax.nn.softmax(scores, axis=0)
    node_w = jnp.zeros((num_nodes, num_heads), f32).at[src_mapped].add(soft)
    edge_w = node_w[src_mapped]                               # (E, H)
    weighted = edge_w[:, :, None] * ve                        # (E, H, d)
    out = jnp.zeros((num_nodes, num_heads, head_dim), f32).at[src_mapped].add(weighted)
    out = out.reshape(num_nodes, D)

    h1 = ln(x2d + out, params["g1"], params["beta1"])
    return ln(h1 + ffn(h1), params["g2"], params["beta2"])[None]


# ----------------------------------------------------------------------------
# Main
# ----------------------------------------------------------------------------

if __name__ == "__main__":
    input_size = 32
    num_heads = 4
    num_nodes = 8
    total_nodes = 12

    # deterministic adjacency over the full graph: self loops + 2 out-neighbours
    adj = np.zeros((total_nodes, total_nodes), dtype=np.int32)
    for i in range(total_nodes):
        adj[i, i] = 1
        adj[i, (i + 1) % total_nodes] = 1
        adj[i, (i + 3) % total_nodes] = 1
    node_indices = np.array([0, 2, 3, 5, 6, 7, 9, 11], dtype=np.int32)

    # deterministic parameter init (synthetic weights, no checkpoint)
    key = jax.random.PRNGKey(0)
    ks = jax.random.split(key, 10)
    D = input_size
    params = {
        # weight matrices stored in bf16 (fed to the bf16 MXU path in the kernel)
        "w_qkv": (0.1 * jax.random.normal(ks[0], (D, 3 * D), jnp.float32)).astype(jnp.bfloat16),
        "b_qkv": 0.05 * jax.random.normal(ks[1], (1, 3 * D), jnp.float32),
        "w1":    (0.1 * jax.random.normal(ks[2], (D, 4 * D), jnp.float32)).astype(jnp.bfloat16),
        "b1":    0.05 * jax.random.normal(ks[3], (1, 4 * D), jnp.float32),
        "w2":    (0.1 * jax.random.normal(ks[4], (4 * D, D), jnp.float32)).astype(jnp.bfloat16),
        "b2":    0.05 * jax.random.normal(ks[5], (1, D), jnp.float32),
        "g1":    1.0 + 0.1 * jax.random.normal(ks[6], (1, D), jnp.float32),
        "beta1": 0.05 * jax.random.normal(ks[7], (1, D), jnp.float32),
        "g2":    1.0 + 0.1 * jax.random.normal(ks[8], (1, D), jnp.float32),
        "beta2": jnp.zeros((1, D), jnp.float32),
    }

    x = jax.random.normal(ks[9], (1, num_nodes, D), jnp.float32)

    # --- fused attention + FFN path ---
    out, src_mapped, tgt_mapped = transformer_block_forward(
        x, node_indices, adj, params, num_heads)
    out = jax.block_until_ready(out)

    ref = jax.block_until_ready(
        reference_forward(x, jnp.asarray(src_mapped), jnp.asarray(tgt_mapped),
                          params, num_heads))

    assert out.shape == (1, num_nodes, D)
    np.testing.assert_allclose(np.asarray(out), np.asarray(ref), rtol=5e-3, atol=5e-3)

    # --- num_edges == 0 fallback (FFN-only path of the PyTorch module) ---
    adj_empty = np.zeros((total_nodes, total_nodes), dtype=np.int32)
    out0, s0, t0 = transformer_block_forward(
        x, node_indices, adj_empty, params, num_heads)
    out0 = jax.block_until_ready(out0)
    ref0 = jax.block_until_ready(
        reference_forward(x, jnp.asarray(s0), jnp.asarray(t0), params, num_heads))
    np.testing.assert_allclose(np.asarray(out0), np.asarray(ref0), rtol=5e-3, atol=5e-3)

    print("KERNEL_OK")
</pallas_src>

<mosaic_0001>
module attributes {stable_mosaic.version = 11 : i64} {
  func.func @_fused_block_kernel(%arg0: memref<8x32xf32, #tpu.memory_space<vmem>>, %arg1: memref<32x32xbf16, #tpu.memory_space<vmem>>, %arg2: memref<1x32xf32, #tpu.memory_space<vmem>>, %arg3: memref<32x32xbf16, #tpu.memory_space<vmem>>, %arg4: memref<1x32xf32, #tpu.memory_space<vmem>>, %arg5: memref<32x32xbf16, #tpu.memory_space<vmem>>, %arg6: memref<1x32xf32, #tpu.memory_space<vmem>>, %arg7: memref<18x8xbf16, #tpu.memory_space<vmem>>, %arg8: memref<8x18xbf16, #tpu.memory_space<vmem>>, %arg9: memref<18x8xbf16, #tpu.memory_space<vmem>>, %arg10: memref<32x4xbf16, #tpu.memory_space<vmem>>, %arg11: memref<4x32xbf16, #tpu.memory_space<vmem>>, %arg12: memref<1x32xf32, #tpu.memory_space<vmem>>, %arg13: memref<1x32xf32, #tpu.memory_space<vmem>>, %arg14: memref<32x128xbf16, #tpu.memory_space<vmem>>, %arg15: memref<1x128xf32, #tpu.memory_space<vmem>>, %arg16: memref<128x32xbf16, #tpu.memory_space<vmem>>, %arg17: memref<1x32xf32, #tpu.memory_space<vmem>>, %arg18: memref<1x32xf32, #tpu.memory_space<vmem>>, %arg19: memref<1x32xf32, #tpu.memory_space<vmem>>, %arg20: memref<8x32xf32, #tpu.memory_space<vmem>>) attributes {dimension_semantics = [], scalar_prefetch = 0 : i64, scratch_operands = 0 : i64, tpu.core_type = #tpu.core_type<tc>} {
    %c0 = arith.constant 0 : index
    %c0_0 = arith.constant 0 : index
    %0 = vector.load %arg0[%c0, %c0_0] : memref<8x32xf32, #tpu.memory_space<vmem>>, vector<8x32xf32>
    %1 = arith.truncf %0 : vector<8x32xf32> to vector<8x32xbf16>
    %c0_1 = arith.constant 0 : index
    %c0_2 = arith.constant 0 : index
    %2 = vector.load %arg1[%c0_1, %c0_2] : memref<32x32xbf16, #tpu.memory_space<vmem>>, vector<32x32xbf16>
    %cst = arith.constant dense<0.000000e+00> : vector<8x32xf32>
    %3 = tpu.matmul %1, %2, %cst {dimension_numbers = #tpu.dot_dimension_numbers<[1], [0], [0], [1], [0, 0, 1, 1], [], []>} : vector<8x32xbf16>, vector<32x32xbf16>, vector<8x32xf32> -> vector<8x32xf32>
    %c0_3 = arith.constant 0 : index
    %c0_4 = arith.constant 0 : index
    %4 = vector.load %arg2[%c0_3, %c0_4] : memref<1x32xf32, #tpu.memory_space<vmem>>, vector<1x32xf32>
    %5 = vector.broadcast %4 : vector<1x32xf32> to vector<8x32xf32>
    %6 = arith.addf %3, %5 : vector<8x32xf32>
    %c0_5 = arith.constant 0 : index
    %c0_6 = arith.constant 0 : index
    %7 = vector.load %arg3[%c0_5, %c0_6] : memref<32x32xbf16, #tpu.memory_space<vmem>>, vector<32x32xbf16>
    %cst_7 = arith.constant dense<0.000000e+00> : vector<8x32xf32>
    %8 = tpu.matmul %1, %7, %cst_7 {dimension_numbers = #tpu.dot_dimension_numbers<[1], [0], [0], [1], [0, 0, 1, 1], [], []>} : vector<8x32xbf16>, vector<32x32xbf16>, vector<8x32xf32> -> vector<8x32xf32>
    %c0_8 = arith.constant 0 : index
    %c0_9 = arith.constant 0 : index
    %9 = vector.load %arg4[%c0_8, %c0_9] : memref<1x32xf32, #tpu.memory_space<vmem>>, vector<1x32xf32>
    %10 = vector.broadcast %9 : vector<1x32xf32> to vector<8x32xf32>
    %11 = arith.addf %8, %10 : vector<8x32xf32>
    %c0_10 = arith.constant 0 : index
    %c0_11 = arith.constant 0 : index
    %12 = vector.load %arg5[%c0_10, %c0_11] : memref<32x32xbf16, #tpu.memory_space<vmem>>, vector<32x32xbf16>
    %cst_12 = arith.constant dense<0.000000e+00> : vector<8x32xf32>
    %13 = tpu.matmul %1, %12, %cst_12 {dimension_numbers = #tpu.dot_dimension_numbers<[1], [0], [0], [1], [0, 0, 1, 1], [], []>} : vector<8x32xbf16>, vector<32x32xbf16>, vector<8x32xf32> -> vector<8x32xf32>
    %c0_13 = arith.constant 0 : index
    %c0_14 = arith.constant 0 : index
    %14 = vector.load %arg6[%c0_13, %c0_14] : memref<1x32xf32, #tpu.memory_space<vmem>>, vector<1x32xf32>
    %15 = vector.broadcast %14 : vector<1x32xf32> to vector<8x32xf32>
    %16 = arith.addf %13, %15 : vector<8x32xf32>
    %c0_15 = arith.constant 0 : index
    %c0_16 = arith.constant 0 : index
    %17 = vector.load %arg7[%c0_15, %c0_16] : memref<18x8xbf16, #tpu.memory_space<vmem>>, vector<18x8xbf16>
    %18 = arith.extf %17 : vector<18x8xbf16> to vector<18x8xf32>
    %c0_17 = arith.constant 0 : index
    %c0_18 = arith.constant 0 : index
    %19 = vector.load %arg8[%c0_17, %c0_18] : memref<8x18xbf16, #tpu.memory_space<vmem>>, vector<8x18xbf16>
    %20 = arith.extf %19 : vector<8x18xbf16> to vector<8x18xf32>
    %c0_19 = arith.constant 0 : index
    %c0_20 = arith.constant 0 : index
    %21 = vector.load %arg9[%c0_19, %c0_20] : memref<18x8xbf16, #tpu.memory_space<vmem>>, vector<18x8xbf16>
    %22 = arith.extf %21 : vector<18x8xbf16> to vector<18x8xf32>
    %c0_21 = arith.constant 0 : index
    %c0_22 = arith.constant 0 : index
    %23 = vector.load %arg10[%c0_21, %c0_22] : memref<32x4xbf16, #tpu.memory_space<vmem>>, vector<32x4xbf16>
    %24 = arith.extf %23 : vector<32x4xbf16> to vector<32x4xf32>
    %c0_23 = arith.constant 0 : index
    %c0_24 = arith.constant 0 : index
    %25 = vector.load %arg11[%c0_23, %c0_24] : memref<4x32xbf16, #tpu.memory_space<vmem>>, vector<4x32xbf16>
    %26 = arith.extf %25 : vector<4x32xbf16> to vector<4x32xf32>
    %cst_25 = arith.constant dense<0.000000e+00> : vector<18x32xf32>
    %27 = tpu.matmul %18, %6, %cst_25 {dimension_numbers = #tpu.dot_dimension_numbers<[1], [0], [0], [1], [0, 0, 1, 1], [], []>} : vector<18x8xf32>, vector<8x32xf32>, vector<18x32xf32> -> vector<18x32xf32>
    %cst_26 = arith.constant dense<0.000000e+00> : vector<18x32xf32>
    %28 = tpu.matmul %22, %11, %cst_26 {dimension_numbers = #tpu.dot_dimension_numbers<[1], [0], [0], [1], [0, 0, 1, 1], [], []>} : vector<18x8xf32>, vector<8x32xf32>, vector<18x32xf32> -> vector<18x32xf32>
    %cst_27 = arith.constant dense<0.000000e+00> : vector<18x32xf32>
    %29 = tpu.matmul %22, %16, %cst_27 {dimension_numbers = #tpu.dot_dimension_numbers<[1], [0], [0], [1], [0, 0, 1, 1], [], []>} : vector<18x8xf32>, vector<8x32xf32>, vector<18x32xf32> -> vector<18x32xf32>
    %30 = arith.mulf %27, %28 : vector<18x32xf32>
    %cst_28 = arith.constant dense<0.000000e+00> : vector<18x4xf32>
    %31 = tpu.matmul %30, %24, %cst_28 {dimension_numbers = #tpu.dot_dimension_numbers<[1], [0], [0], [1], [0, 0, 1, 1], [], []>} : vector<18x32xf32>, vector<32x4xf32>, vector<18x4xf32> -> vector<18x4xf32>
    %cst_29 = arith.constant 0.353553385 : f32
    %32 = vector.broadcast %cst_29 : f32 to vector<18x4xf32>
    %33 = arith.mulf %31, %32 : vector<18x4xf32>
    %cst_30 = arith.constant dense<0xFF800000> : vector<4xf32>
    %34 = vector.multi_reduction <maximumf>, %33, %cst_30 [0] : vector<18x4xf32> to vector<4xf32>
    %35 = vector.shape_cast %34 : vector<4xf32> to vector<1x4xf32>
    %36 = vector.broadcast %35 : vector<1x4xf32> to vector<18x4xf32>
    %37 = arith.subf %33, %36 : vector<18x4xf32>
    %38 = math.exp %37 : vector<18x4xf32>
    %cst_31 = arith.constant dense<0.000000e+00> : vector<4xf32>
    %39 = vector.multi_reduction <add>, %38, %cst_31 [0] : vector<18x4xf32> to vector<4xf32>
    %40 = vector.shape_cast %39 : vector<4xf32> to vector<1x4xf32>
    %41 = tpu.reciprocal %40 {approx = true} : vector<1x4xf32> -> vector<1x4xf32>
    %42 = vector.broadcast %41 : vector<1x4xf32> to vector<18x4xf32>
    %43 = arith.mulf %38, %42 : vector<18x4xf32>
    %cst_32 = arith.constant dense<0.000000e+00> : vector<8x4xf32>
    %44 = tpu.matmul %20, %43, %cst_32 {dimension_numbers = #tpu.dot_dimension_numbers<[1], [0], [0], [1], [0, 0, 1, 1], [], []>} : vector<8x18xf32>, vector<18x4xf32>, vector<8x4xf32> -> vector<8x4xf32>
    %cst_33 = arith.constant dense<0.000000e+00> : vector<18x4xf32>
    %45 = tpu.matmul %18, %44, %cst_33 {dimension_numbers = #tpu.dot_dimension_numbers<[1], [0], [0], [1], [0, 0, 1, 1], [], []>} : vector<18x8xf32>, vector<8x4xf32>, vector<18x4xf32> -> vector<18x4xf32>
    %cst_34 = arith.constant dense<0.000000e+00> : vector<18x32xf32>
    %46 = tpu.matmul %45, %26, %cst_34 {dimension_numbers = #tpu.dot_dimension_numbers<[1], [0], [0], [1], [0, 0, 1, 1], [], []>} : vector<18x4xf32>, vector<4x32xf32>, vector<18x32xf32> -> vector<18x32xf32>
    %47 = arith.mulf %46, %29 : vector<18x32xf32>
    %cst_35 = arith.constant dense<0.000000e+00> : vector<8x32xf32>
    %48 = tpu.matmul %20, %47, %cst_35 {dimension_numbers = #tpu.dot_dimension_numbers<[1], [0], [0], [1], [0, 0, 1, 1], [], []>} : vector<8x18xf32>, vector<18x32xf32>, vector<8x32xf32> -> vector<8x32xf32>
    %49 = arith.addf %0, %48 : vector<8x32xf32>
    %c0_36 = arith.constant 0 : index
    %c0_37 = arith.constant 0 : index
    %50 = vector.load %arg12[%c0_36, %c0_37] : memref<1x32xf32, #tpu.memory_space<vmem>>, vector<1x32xf32>
    %c0_38 = arith.constant 0 : index
    %c0_39 = arith.constant 0 : index
    %51 = vector.load %arg13[%c0_38, %c0_39] : memref<1x32xf32, #tpu.memory_space<vmem>>, vector<1x32xf32>
    %cst_40 = arith.constant dense<0.000000e+00> : vector<8xf32>
    %52 = vector.multi_reduction <add>, %49, %cst_40 [1] : vector<8x32xf32> to vector<8xf32>
    %53 = vector.shape_cast %52 : vector<8xf32> to vector<8x1xf32>
    %cst_41 = arith.constant 3.200000e+01 : f32
    %54 = vector.broadcast %cst_41 : f32 to vector<8x1xf32>
    %55 = arith.divf %53, %54 : vector<8x1xf32>
    %56 = vector.broadcast %55 : vector<8x1xf32> to vector<8x32xf32>
    %57 = arith.subf %49, %56 : vector<8x32xf32>
    %58 = arith.mulf %57, %57 : vector<8x32xf32>
    %cst_42 = arith.constant dense<0.000000e+00> : vector<8xf32>
    %59 = vector.multi_reduction <add>, %58, %cst_42 [1] : vector<8x32xf32> to vector<8xf32>
    %60 = vector.shape_cast %59 : vector<8xf32> to vector<8x1xf32>
    %cst_43 = arith.constant 3.200000e+01 : f32
    %61 = vector.broadcast %cst_43 : f32 to vector<8x1xf32>
    %62 = arith.divf %60, %61 : vector<8x1xf32>
    %63 = vector.broadcast %55 : vector<8x1xf32> to vector<8x32xf32>
    %64 = arith.subf %49, %63 : vector<8x32xf32>
    %cst_44 = arith.constant 9.99999974E-6 : f32
    %65 = vector.broadcast %cst_44 : f32 to vector<8x1xf32>
    %66 = arith.addf %62, %65 : vector<8x1xf32>
    %67 = math.rsqrt %66 : vector<8x1xf32>
    %68 = vector.broadcast %67 : vector<8x1xf32> to vector<8x32xf32>
    %69 = arith.mulf %64, %68 : vector<8x32xf32>
    %70 = vector.broadcast %50 : vector<1x32xf32> to vector<8x32xf32>
    %71 = arith.mulf %69, %70 : vector<8x32xf32>
    %72 = vector.broadcast %51 : vector<1x32xf32> to vector<8x32xf32>
    %73 = arith.addf %71, %72 : vector<8x32xf32>
    %74 = arith.truncf %73 : vector<8x32xf32> to vector<8x32xbf16>
    %c0_45 = arith.constant 0 : index
    %c0_46 = arith.constant 0 : index
    %75 = vector.load %arg14[%c0_45, %c0_46] : memref<32x128xbf16, #tpu.memory_space<vmem>>, vector<32x128xbf16>
    %cst_47 = arith.constant dense<0.000000e+00> : vector<8x128xf32>
    %76 = tpu.matmul %74, %75, %cst_47 {dimension_numbers = #tpu.dot_dimension_numbers<[1], [0], [0], [1], [0, 0, 1, 1], [], []>} : vector<8x32xbf16>, vector<32x128xbf16>, vector<8x128xf32> -> vector<8x128xf32>
    %c0_48 = arith.constant 0 : index
    %c0_49 = arith.constant 0 : index
    %77 = vector.load %arg15[%c0_48, %c0_49] : memref<1x128xf32, #tpu.memory_space<vmem>>, vector<1x128xf32>
    %78 = vector.broadcast %77 : vector<1x128xf32> to vector<8x128xf32>
    %79 = arith.addf %76, %78 : vector<8x128xf32>
    %cst_50 = arith.constant 0.000000e+00 : f32
    %80 = vector.broadcast %cst_50 : f32 to vector<8x128xf32>
    %81 = arith.maximumf %79, %80 : vector<8x128xf32>
    %82 = arith.truncf %81 : vector<8x128xf32> to vector<8x128xbf16>
    %c0_51 = arith.constant 0 : index
    %c0_52 = arith.constant 0 : index
    %83 = vector.load %arg16[%c0_51, %c0_52] : memref<128x32xbf16, #tpu.memory_space<vmem>>, vector<128x32xbf16>
    %cst_53 = arith.constant dense<0.000000e+00> : vector<8x32xf32>
    %84 = tpu.matmul %82, %83, %cst_53 {dimension_numbers = #tpu.dot_dimension_numbers<[1], [0], [0], [1], [0, 0, 1, 1], [], []>} : vector<8x128xbf16>, vector<128x32xbf16>, vector<8x32xf32> -> vector<8x32xf32>
    %c0_54 = arith.constant 0 : index
    %c0_55 = arith.constant 0 : index
    %85 = vector.load %arg17[%c0_54, %c0_55] : memref<1x32xf32, #tpu.memory_space<vmem>>, vector<1x32xf32>
    %86 = vector.broadcast %85 : vector<1x32xf32> to vector<8x32xf32>
    %87 = arith.addf %84, %86 : vector<8x32xf32>
    %88 = arith.addf %73, %87 : vector<8x32xf32>
    %c0_56 = arith.constant 0 : index
    %c0_57 = arith.constant 0 : index
    %89 = vector.load %arg18[%c0_56, %c0_57] : memref<1x32xf32, #tpu.memory_space<vmem>>, vector<1x32xf32>
    %c0_58 = arith.constant 0 : index
    %c0_59 = arith.constant 0 : index
    %90 = vector.load %arg19[%c0_58, %c0_59] : memref<1x32xf32, #tpu.memory_space<vmem>>, vector<1x32xf32>
    %cst_60 = arith.constant dense<0.000000e+00> : vector<8xf32>
    %91 = vector.multi_reduction <add>, %88, %cst_60 [1] : vector<8x32xf32> to vector<8xf32>
    %92 = vector.shape_cast %91 : vector<8xf32> to vector<8x1xf32>
    %cst_61 = arith.constant 3.200000e+01 : f32
    %93 = vector.broadcast %cst_61 : f32 to vector<8x1xf32>
    %94 = arith.divf %92, %93 : vector<8x1xf32>
    %95 = vector.broadcast %94 : vector<8x1xf32> to vector<8x32xf32>
    %96 = arith.subf %88, %95 : vector<8x32xf32>
    %97 = arith.mulf %96, %96 : vector<8x32xf32>
    %cst_62 = arith.constant dense<0.000000e+00> : vector<8xf32>
    %98 = vector.multi_reduction <add>, %97, %cst_62 [1] : vector<8x32xf32> to vector<8xf32>
    %99 = vector.shape_cast %98 : vector<8xf32> to vector<8x1xf32>
    %cst_63 = arith.constant 3.200000e+01 : f32
    %100 = vector.broadcast %cst_63 : f32 to vector<8x1xf32>
    %101 = arith.divf %99, %100 : vector<8x1xf32>
    %102 = vector.broadcast %94 : vector<8x1xf32> to vector<8x32xf32>
    %103 = arith.subf %88, %102 : vector<8x32xf32>
    %cst_64 = arith.constant 9.99999974E-6 : f32
    %104 = vector.broadcast %cst_64 : f32 to vector<8x1xf32>
    %105 = arith.addf %101, %104 : vector<8x1xf32>
    %106 = math.rsqrt %105 : vector<8x1xf32>
    %107 = vector.broadcast %106 : vector<8x1xf32> to vector<8x32xf32>
    %108 = arith.mulf %103, %107 : vector<8x32xf32>
    %109 = vector.broadcast %89 : vector<1x32xf32> to vector<8x32xf32>
    %110 = arith.mulf %108, %109 : vector<8x32xf32>
    %111 = vector.broadcast %90 : vector<1x32xf32> to vector<8x32xf32>
    %112 = arith.addf %110, %111 : vector<8x32xf32>
    %c0_65 = arith.constant 0 : index
    %c0_66 = arith.constant 0 : index
    %113 = vector.load %arg20[%c0_65, %c0_66] : memref<8x32xf32, #tpu.memory_space<vmem>>, vector<8x32xf32>
    tpu.vector_store %arg20[%c0_65, %c0_66], %112 {strides = array<i32>} : memref<8x32xf32, #tpu.memory_space<vmem>>, vector<8x32xf32>,
    return
  }
}

</mosaic_0001>

<bundles_post_ra>
// kernel: tpu_custom_call.1
= control target key start
LH: loop header
LB: loop body
LE: loop exit
PB: predicated region body
PF: predicated region fallthrough
CT: control target
= control target key end

     0   :  { %s1155_s0 = inlined_call_operand.vmem [shape: f32[8,32], index: 0, kind: input, shape index: {}]   ;;  %s1156_s1 = inlined_call_operand.vmem [shape: bf16[32,32], index: 1, kind: input, shape index: {}]   ;;  %s1157_s2 = inlined_call_operand.vmem [shape: f32[1,32], index: 2, kind: input, shape index: {}]   ;;  %s1158_s3 = inlined_call_operand.vmem [shape: bf16[32,32], index: 3, kind: input, shape index: {}]   ;;  %s1159_s4 = inlined_call_operand.vmem [shape: f32[1,32], index: 4, kind: input, shape index: {}]   ;;  %s1160_s5 = inlined_call_operand.vmem [shape: bf16[32,32], index: 5, kind: input, shape index: {}]   ;;  %s1161_s6 = inlined_call_operand.vmem [shape: f32[1,32], index: 6, kind: input, shape index: {}]   ;;  %s1162_s7 = inlined_call_operand.vmem [shape: bf16[18,8], index: 7, kind: input, shape index: {}]   ;;  %s1163_s8 = inlined_call_operand.vmem [shape: bf16[8,18], index: 8, kind: input, shape index: {}]   ;;  %s1164_s9 = inlined_call_operand.vmem [shape: bf16[18,8], index: 9, kind: input, shape index: {}]   ;;  %s1165_s10 = inlined_call_operand.vmem [shape: bf16[32,4], index: 10, kind: input, shape index: {}]   ;;  %s1166_s11 = inlined_call_operand.vmem [shape: bf16[4,32], index: 11, kind: input, shape index: {}]   ;;  %s1167_s12 = inlined_call_operand.vmem [shape: f32[1,32], index: 12, kind: input, shape index: {}]   ;;  %s1168_s13 = inlined_call_operand.vmem [shape: f32[1,32], index: 13, kind: input, shape index: {}]   ;;  %s1169_s14 = inlined_call_operand.vmem [shape: bf16[32,128], index: 14, kind: input, shape index: {}]   ;;  %s1170_s15 = inlined_call_operand.vmem [shape: f32[1,128], index: 15, kind: input, shape index: {}]   ;;  %s1171_s16 = inlined_call_operand.vmem [shape: bf16[128,32], index: 16, kind: input, shape index: {}]   ;;  %s1172_s17 = inlined_call_operand.vmem [shape: f32[1,32], index: 17, kind: input, shape index: {}]   ;;  %s1173_s18 = inlined_call_operand.vmem [shape: f32[1,32], index: 18, kind: input, shape index: {}]   ;;  %s1174_s19 = inlined_call_operand.vmem [shape: f32[1,32], index: 19, kind: input, shape index: {}]   ;;  %s1175_s20 = inlined_call_operand.hbm [shape: f32[8,32], index: 20, kind: output, shape index: {}]  }
   0x1   :  { %1178 = sst [smem:[#allocation5_spill]] %s1155_s0 }
   0x2   :  { %1179 = sst [smem:[#allocation6_spill]] %s1156_s1 }
   0x3   :  { %1180 = sst [smem:[#allocation7_spill]] %s1157_s2 }
   0x4   :  { %1181 = sst [smem:[#allocation8_spill]] %s1158_s3 }
   0x5   :  { %1182 = sst [smem:[#allocation9_spill]] %s1159_s4 }
   0x6   :  { %1183 = sst [smem:[#allocation10_spill]] %s1170_s15 }
   0x7   :  { %s1184_s23 = sld [smem:[#allocation6_spill]] }
   0x8   :  { %s1185_s15 = sld [smem:[#allocation8_spill]] }
   0x9   :  { %s1186_s29 = sld [smem:[#allocation5_spill]] }
   0xd   :  { %v792_v0 = vld [vmem:[%s1184_s23 + $0x8] sm:$0xff]  ;;  %v791_v2 = vld [vmem:[%s1184_s23] sm:$0xff] }
   0xe   :  { %v794_v1 = vld [vmem:[%s1185_s15 + $0x8] sm:$0xff]  ;;  %v793_v3 = vld [vmem:[%s1185_s15] sm:$0xff]  ;;  %99 = vmatpush.bf16.msra.mxu0 %v792_v0 }
   0xf   :  { %132 = vmatpush.bf16.msra.mxu1 %v794_v1  ;;  %v998_v4 = vld [vmem:[%s1186_s29] sm:$0xff] }
  0x10   :  { %25 = vsyncpa [#allocation3], 0  ;;  %v68_v5 = vpack.c.bf16 %v998_v4, %v998_v4  ;;  %vm89_vm0 = vcmask 261120   ;;  %v796_v6 = vld [vmem:[%s1160_s5 + $0x8] sm:$0xff]  ;;  %v795_v8 = vld [vmem:[%s1160_s5] sm:$0xff]  ;;  %s1187_s2 = sld [smem:[#allocation7_spill]] }
  0x11   :  { %v823_v7 = vld [vmem:[%s1165_s10 + $0x8] sm:$0xff]   ;;  %165 = vmatpush.bf16.msra.mxu2 %v796_v6  ;;  %s1188_s26 = sld [smem:[#allocation9_spill]]  ;;  %v1022_v13 = vld [vmem:[%s1162_s7] sm:$0xff]   ;;  %vm196_vm1 = vcmask 64512   ;;  %vm334_vm2 = vcmask 31744   ;;  %vm337_vm3 = vcmask 25600  }
  0x12   :  { %100 = vmatpush.bf16.msra.mxu0 %v791_v2  ;;  %v822_v9 = vunpack.c.h.bf16 %v823_v7  ;;  %v821_v10 = vunpack.c.l.bf16 %v823_v7  ;;  %v812_v14 = vld [vmem:[%s1164_s9] sm:$0xff]   ;;  %v1030_v15 = vld [vmem:[%s1162_s7 + $0x8] sm:$0x1]  ;;  %v809_v18 = vunpack.c.l.bf16 %v1022_v13  ;;  %v810_v25 = vunpack.c.h.bf16 %v1022_v13  ;;  %s877_s3 = smov [#allocation2]   ;;  %s691_s4 = sshll.u32 %s1175_s20, 4  ;;  %s692_s4 = int_to_ptr.hbm [resolvable:$true] %s691_s4 }
  0x13   :  { %133 = vmatpush.bf16.msra.mxu1 %v793_v3  ;;  %v813_v19 = vunpack.c.l.bf16 %v812_v14  ;;  %v177_v22 = vunpack.c.l.bf16 %v1030_v15  ;;  %v814_v26 = vunpack.c.h.bf16 %v812_v14  ;;  %v182_v27 = vld [vmem:[%s1164_s9 + $0x8] sm:$0x1]  ;;  %v816_v29 = vld [vmem:[%s1165_s10] sm:$0xff]   ;;  %vm375_vm4 = vcmask 1041408  }
  0x14   :  { %v185_v28 = vunpack.c.l.bf16 %v182_v27  ;;  %v818_v30 = vunpack.c.h.bf16 %v816_v29  ;;  %v817_v31 = vunpack.c.l.bf16 %v816_v29  ;;  %v829_v32 = vld [vmem:[%s1161_s6] ss:$0 sm:$0xff]  ;;  %vm371_vm5 = vcmask 146432  }
  0x15   :  { %708 = vmatmul.msk.bf16.vlgmr.msra.gmra.mxu0 %vm89_vm0, %v68_v5  ;;  %166 = vmatpush.bf16.msra.mxu2 %v795_v8  ;;  %vm434_vm6 = vcmask 1043456  }
  0x16   :  { %717 = vmatmul.msk.bf16.vlgmr.msra.gmra.mxu1 %vm89_vm0, %v68_v5  ;;  %v827_v11 = vld [vmem:[%s1187_s2] ss:$0 sm:$0xff] }
  0x17   :  { %v828_v12 = vld [vmem:[%s1188_s26] ss:$0 sm:$0xff]  ;;  %s689_s26 = sshll.u32 %s877_s3, 4  ;;  %s690_s26 = int_to_ptr.vmem [resolvable:$true] %s689_s26 }
  0x18   :  { %726 = vmatmul.msk.bf16.vlgmr.msra.gmra.mxu2 %vm89_vm0, %v68_v5 }
  0x19   :  { %317 = vmatpush.msrb.mxu2 %v822_v9 }
  0x1b   :  { %318 = vmatpush.msrb.mxu2 %v821_v10 }
  0x1d   :  { %319 = vmatpush.msrb.mxu2 %v818_v30  ;;  %v194_v30 = vld [vmem:[%s1166_s11] sm:$0x3]  ;;  %s1189_s11 = sld [smem:[#allocation10_spill]] }
  0x1f   :  { %320 = vmatpush.msrb.mxu2 %v817_v31  ;;  %v195_v31 = vunpack.c.l.bf16 %v194_v30 }
  0x92   :  { %v102_v16 = vpop.f32.mrf.mxu0 }
  0x93   :  { %v135_v17 = vpop.f32.mrf.mxu1  ;;  %v103_v20 = vadd.f32 %v827_v11, %v102_v16 }
  0x94   :  { %v136_v21 = vadd.f32 %v828_v12, %v135_v17 }
  0x95   :  { %221 = vmatpush.msrb.mxu1 %v103_v20  ;;  %824 = vmatpush.msra.mxu3 %v103_v20 }
  0x96   :  { %256 = vmatpush.msrb.mxu0 %v136_v21  ;;  %727 = vmatmul.msk.f32.vlgmr.msrb.gmra.mxu1 %vm196_vm1, %v809_v18 }
  0x97   :  { %730 = vmatmul.msk.f32.vlgmr.msrb.gmra.mxu0 %vm196_vm1, %v813_v19  ;;  %729 = vmatmul.msk.f32.vlgmr.msra.gmra.mxu3 %vm196_vm1, %v177_v22 }
  0x98   :  { %744 = vmatpush.msk.msra.mxu0 %vm434_vm6, %v195_v31 }
  0x9a   :  { %v104_v23 = vpop.f32.mrf.mxu0 }
  0x9b   :  { %v137_v24 = vpop.f32.mrf.mxu1  ;;  %v168_v34 = vpop.f32.mrf.mxu2 }
  0x9c   :  { %v169_v36 = vadd.f32 %v829_v32, %v168_v34 }
  0x9e   :  { %728 = vmatmul.msk.f32.gmra.mxu1 %vm196_vm1, %v810_v25 }
  0x9f   :  { %731 = vmatmul.msk.f32.gmra.mxu0 %vm196_vm1, %v814_v26  ;;  %282 = vmatpush.msra.mxu1 %v169_v36 }
  0xa3   :  { %v170_v39 = vpop.f32.mrf.mxu2 }
  0xa6   :  { %733 = vmatmul.msk.f32.vlgmr.msra.gmra.mxu1 %vm196_vm1, %v813_v19 }
  0xa7   :  { %732 = vmatmul.msk.f32.gmra.mxu0 %vm196_vm1, %v185_v28 }
  0xae   :  { %734 = vmatmul.msk.f32.gmra.mxu1 %vm196_vm1, %v814_v26  ;;  %v178_v26 = vld [vmem:[%s1163_s8] sm:$0xf] }
  0xb6   :  { %735 = vmatmul.msk.f32.gmra.mxu1 %vm196_vm1, %v185_v28  ;;  %v179_v28 = vunpack.c.l.bf16 %v178_v26 }
 0x113   :  { %v223_v33 = vpop.f32.mrf.mxu1 }
 0x114   :  { %v258_v35 = vpop.f32.mrf.mxu0 }
 0x115   :  { %v293_v37 = vmul.f32 %v258_v35, %v223_v33 }
 0x117   :  { %736 = vmatmul.msk.f32.vlgmr.msrb.gmra.mxu2 %vm89_vm0, %v293_v37 }
 0x11a   :  { %v229_v42 = vpop.f32.mrf.mxu3 }
 0x11b   :  { %v226_v38 = vpop.f32.mrf.mxu1 }
 0x11c   :  { %v261_v40 = vpop.f32.mrf.mxu0 }
 0x11d   :  { %v294_v41 = vmul.f32 %v261_v40, %v226_v38 }
 0x11f   :  { %737 = vmatmul.msk.f32.gmra.mxu2 %vm89_vm0, %v294_v41 }
 0x123   :  { %v284_v36 = vpop.f32.mrf.mxu1 }
 0x124   :  { %v264_v43 = vpop.f32.mrf.mxu0 }
 0x125   :  { %v295_v44 = vmul.f32 %v264_v43, %v229_v42  ;;  %v876_v43 = vmov 32.0  }
 0x127   :  { %738 = vmatmul.msk.f32.gmra.mxu2 %vm89_vm0, %v295_v44 }
 0x19a   :  { %v322_v45 = vpop.f32.mrf.mxu2 }
 0x19b   :  { %v331_v48 = vmul.f32 0.35355338, %v322_v45 }
 0x19d   :  { %v335_v51 = vsel %vm334_vm2, %v331_v48, -inf }
 0x1a2   :  { %v325_v46 = vpop.f32.mrf.mxu2 }
 0x1a3   :  { %v332_v47 = vmul.f32 0.35355338, %v325_v46 }
 0x1a5   :  { %v336_v49 = vsel %vm334_vm2, %v332_v47, -inf }
 0x1a6   :  { %v339_v53 = vmax.f32 %v335_v51, %v336_v49 }
 0x1aa   :  { %v328_v50 = vpop.f32.mrf.mxu2 }
 0x1ab   :  { %v333_v52 = vmul.f32 0.35355338, %v328_v50 }
 0x1ad   :  { %v338_v54 = vsel %vm337_vm3, %v333_v52, -inf }
 0x1ae   :  { %v340_v55 = vmax.f32 %v339_v53, %v338_v54  ;;  %v798_v54 = vld [vmem:[%s1169_s14 + $0x8] sm:$0xff] }
 0x1af   :  { %560 = vmatpush.bf16.msra.mxu2 %v798_v54 }
 0x1b0   :  { %v341_v56 = vrot.slane %v340_v55, 4 }
 0x1b2   :  { %v342_v57 = vmax.f32 %v340_v55, %v341_v56  ;;  %v797_v55 = vld [vmem:[%s1169_s14] sm:$0xff]  ;;  %v806_v56 = vld [vmem:[%s1171_s16 + $0x38] sm:$0xff] }
 0x1b3   :  { %561 = vmatpush.bf16.msra.mxu2 %v797_v55 }
 0x1b4   :  { %v343_v58 = vrot.slane %v342_v57, 2 }
 0x1b6   :  { %v344_v59 = vmax.f32 %v342_v57, %v343_v58 }
 0x1b8   :  { %v345_v60 = vrot.slane %v344_v59, 1 }
 0x1ba   :  { %v346_v61 = vmax.f32 %v344_v59, %v345_v60  ;;  %v805_v59 = vld [vmem:[%s1171_s16 + $0x30] sm:$0xff] }
 0x1bc   :  { %v347_v62 = vsub.f32 %v331_v48, %v346_v61  ;;  %v348_v63 = vsub.f32 %v332_v47, %v346_v61  ;;  %v349_v0 = vsub.f32 %v333_v52, %v346_v61  ;;  %v804_v61 = vld [vmem:[%s1171_s16 + $0x28] sm:$0xff] }
 0x1be   :  { %v350_v1 = vmul.f32 1.442695, %v347_v62  ;;  %v352_v2 = vmul.f32 1.442695, %v348_v63  ;;  %v354_v3 = vmul.f32 1.442695, %v349_v0 }
 0x1bf   :  { %v803_v62 = vld [vmem:[%s1171_s16 + $0x20] sm:$0xff] }
 0x1c0   :  { %836 = vpow2.f32 %v350_v1  ;;  %v802_v1 = vld [vmem:[%s1171_s16 + $0x18] sm:$0xff] }
 0x1c1   :  { %838 = vpow2.f32 %v352_v2 }
 0x1c2   :  { %840 = vpow2.f32 %v354_v3 }
 0x1c6   :  { %v837_v5 = vpop.eup %836 }
 0x1c7   :  { %v839_v6 = vpop.eup %838  ;;  %v356_v7 = vsel %vm334_vm2, %v837_v5, 0.0 }
 0x1c8   :  { %v841_v8 = vpop.eup %840  ;;  %v357_v9 = vsel %vm334_vm2, %v839_v6, 0.0 }
 0x1c9   :  { %v358_v10 = vadd.f32 %v357_v9, %v356_v7  ;;  %v359_v11 = vsel %vm337_vm3, %v841_v8, 0.0 }
 0x1cb   :  { %v360_v12 = vadd.f32 %v359_v11, %v358_v10  ;;  %v831_v10 = vld [vmem:[%s1168_s13] ss:$0 sm:$0xff] }
 0x1cd   :  { %v361_v14 = vrot.slane %v360_v12, 4 }
 0x1cf   :  { %v362_v16 = vadd.f32 %v361_v14, %v360_v12 }
 0x1d1   :  { %v363_v17 = vrot.slane %v362_v16, 2 }
 0x1d3   :  { %v364_v19 = vadd.f32 %v363_v17, %v362_v16  ;;  %v800_v17 = vld [vmem:[%s1171_s16 + $0x8] sm:$0xff] }
 0x1d5   :  { %v365_v20 = vrot.slane %v364_v19, 1 }
 0x1d7   :  { %v366_v21 = vadd.f32 %v365_v20, %v364_v19  ;;  %v799_v19 = vld [vmem:[%s1171_s16] sm:$0xff] }
 0x1d8   :  { %v832_v20 = vld [vmem:[%s1189_s11] ss:$0 sm:$0xff] }
 0x1d9   :  { %842 = vrcp.f32 %v366_v21 }
 0x1da   :  { %844 = vrcp.f32 %v876_v43  ;;  %v834_v43 = vld [vmem:[%s1173_s18] ss:$0 sm:$0xff] }
 0x1df   :  { %v843_v23 = vpop.eup %842 }
 0x1e0   :  { %v370_v24 = vmul.f32 %v843_v23, %v841_v8  ;;  %v369_v27 = vmul.f32 %v843_v23, %v839_v6  ;;  %v368_v29 = vmul.f32 %v843_v23, %v837_v5  ;;  %v845_v44 = vpop.eup %844  ;;  %v801_v5 = vld [vmem:[%s1171_s16 + $0x10] sm:$0xff]  ;;  %v830_v8 = vld [vmem:[%s1167_s12] ss:$0 sm:$0xff] }
 0x1e1   :  { %v497_v45 = vmul.f32 32.0, %v845_v44  ;;  %vm501_vm7 = vweird.f32 %v845_v44 }
 0x1e2   :  { %739 = vmatpush.msk.msrb.mxu3 %vm375_vm4, %v370_v24 }
 0x1e3   :  { %v498_v46 = vsub.f32 1.0, %v497_v45 }
 0x1e4   :  { %393 = vmatpush.msrb.mxu3 %v369_v27 }
 0x1e5   :  { %v499_v47 = vmul.f32 %v845_v44, %v498_v46  ;;  %v835_v46 = vld [vmem:[%s1174_s19] ss:$0 sm:$0xff] }
 0x1e6   :  { %394 = vmatpush.msrb.mxu3 %v368_v29 }
 0x1e7   :  { %740 = vmatmul.msk.f32.vlgmr.msrb.gmra.mxu3 %vm371_vm5, %v179_v28  ;;  %v500_v48 = vadd.f32 %v845_v44, %v499_v47 }
 0x1e9   :  { %v1093_v49 = vsel %vm501_vm7, %v845_v44, %v500_v48 }
 0x26a   :  { %v396_v32 = vpop.f32.mrf.mxu3 }
 0x26b   :  { %414 = vmatpush.msra.mxu3 %v396_v32 }
 0x26c   :  { %741 = vmatmul.msk.f32.vlgmr.msra.gmra.mxu3 %vm196_vm1, %v809_v18  ;;  %v287_v18 = vpop.f32.mrf.mxu1 }
 0x26d   :  { %637 = vmatpush.bf16.msrb.mxu3 %v806_v56 }
 0x271   :  { %638 = vmatpush.bf16.msrb.mxu3 %v805_v59 }
 0x274   :  { %742 = vmatmul.msk.f32.gmra.mxu3 %vm196_vm1, %v810_v25  ;;  %v290_v13 = vpop.f32.mrf.mxu1 }
 0x275   :  { %639 = vmatpush.bf16.msrb.mxu3 %v804_v61 }
 0x279   :  { %640 = vmatpush.bf16.msrb.mxu3 %v803_v62 }
 0x27c   :  { %743 = vmatmul.msk.f32.gmra.mxu3 %vm196_vm1, %v177_v22 }
 0x27d   :  { %641 = vmatpush.bf16.msrb.mxu3 %v802_v1 }
 0x281   :  { %642 = vmatpush.bf16.msrb.mxu3 %v801_v5 }
 0x285   :  { %643 = vmatpush.bf16.msrb.mxu3 %v800_v17 }
 0x289   :  { %644 = vmatpush.bf16.msrb.mxu3 %v799_v19 }
 0x2ef   :  { %v416_v33 = vpop.f32.mrf.mxu3 }
 0x2f0   :  { %745 = vmatmul.msk.f32.vlgmr.msra.gmra.mxu0 %vm334_vm2, %v416_v33 }
 0x2f7   :  { %v419_v34 = vpop.f32.mrf.mxu3 }
 0x2f8   :  { %746 = vmatmul.msk.f32.gmra.mxu0 %vm334_vm2, %v419_v34 }
 0x2ff   :  { %v422_v35 = vpop.f32.mrf.mxu3 }
 0x300   :  { %747 = vmatmul.msk.f32.gmra.mxu0 %vm334_vm2, %v422_v35 }
 0x36d   :  { %v455_v37 = vpop.f32.mrf.mxu0 }
 0x36e   :  { %v464_v15 = vmul.f32 %v455_v37, %v284_v36 }
 0x375   :  { %v458_v38 = vpop.f32.mrf.mxu0 }
 0x376   :  { %v465_v40 = vmul.f32 %v458_v38, %v287_v18 }
 0x37d   :  { %v461_v39 = vpop.f32.mrf.mxu0 }
 0x37e   :  { %v466_v25 = vmul.f32 %v461_v39, %v290_v13 }
 0x380   :  { %748 = vmatpush.msk.msrb.mxu1 %vm375_vm4, %v466_v25 }
 0x382   :  { %484 = vmatpush.msrb.mxu1 %v465_v40 }
 0x384   :  { %485 = vmatpush.msrb.mxu1 %v464_v15 }
 0x385   :  { %749 = vmatmul.msk.f32.vlgmr.msrb.gmra.mxu1 %vm371_vm5, %v179_v28  ;;  %v833_v28 = vld [vmem:[%s1172_s17] ss:$0 sm:$0xff] }
 0x402   :  { %v487_v22 = vpop.f32.mrf.mxu1 }
 0x403   :  { %v490_v41 = vadd.f32 %v487_v22, %v998_v4 }
 0x405   :  { %v493_v42 = vsel %vm89_vm0, %v490_v41, 0.0 }
 0x406   :  { %494 = vadd.xlane.f32.xlu0 %v493_v42 }
 0x479   :  { %v495_v50 = vpop.xlane.xlu0 %494 }
 0x47a   :  { %v503_v51 = vmul.f32 %v1093_v49, %v495_v50 }
 0x47c   :  { %v504_v52 = vsub.f32 %v490_v41, %v503_v51 }
 0x47e   :  { %v505_v53 = vmul.f32 %v504_v52, %v504_v52 }
 0x480   :  { %v506_v4 = vsel %vm89_vm0, %v505_v53, 0.0 }
 0x481   :  { %507 = vadd.xlane.f32.xlu0 %v506_v4 }
 0x4f4   :  { %v508_v57 = vpop.xlane.xlu0 %507 }
 0x4f5   :  { %v509_v58 = vmul.f32 %v508_v57, %v1093_v49 }
 0x4f7   :  { %v510_v60 = vadd.f32 1e-05, %v509_v58 }
 0x4f9   :  { %846 = vrsqrt.f32 %v510_v60  ;;  %vm517_vm9 = vweird.f32 %v510_v60 }
 0x4ff   :  { %v847_v63 = vpop.eup %846 }
 0x500   :  { %v512_v0 = vmul.f32 %v847_v63, %v510_v60  ;;  %vm518_vm8 = vweird.f32 %v847_v63 }
 0x501   :  { %vm519_vm10 = vmor %vm517_vm9, %vm518_vm8 }
 0x502   :  { %v513_v2 = vmul.f32 %v847_v63, %v512_v0 }
 0x504   :  { %v514_v3 = vmul.f32 0.5, %v513_v2 }
 0x506   :  { %v515_v6 = vsub.f32 1.5, %v514_v3 }
 0x508   :  { %v516_v7 = vmul.f32 %v847_v63, %v515_v6 }
 0x50a   :  { %v520_v9 = vsel %vm519_vm10, %v847_v63, %v516_v7 }
 0x50b   :  { %v521_v11 = vmul.f32 %v520_v9, %v504_v52 }
 0x50d   :  { %v525_v12 = vmul.f32 %v830_v8, %v521_v11 }
 0x50f   :  { %v529_v14 = vadd.f32 %v831_v10, %v525_v12 }
 0x511   :  { %v530_v16 = vpack.c.bf16 %v529_v14, %v529_v14 }
 0x513   :  { %758 = vmatmul.msk.bf16.vlgmr.msra.gmra.mxu2 %vm89_vm0, %v530_v16 }
 0x596   :  { %v563_v21 = vpop.f32.mrf.mxu2 }
 0x597   :  { %v564_v23 = vadd.f32 %v832_v20, %v563_v21 }
 0x599   :  { %v567_v24 = vmax.f32 %v564_v23, 0.0 }
 0x59b   :  { %v568_v26 = vpack.c.bf16 %v567_v24, %v567_v24 }
 0x59d   :  { %645 = vmatmul.bf16.vlgmr.msrb.gmra.mxu3 %v568_v26 }
 0x59e   :  { %v565_v27 = vpop.f32.mrf.mxu2 }
 0x620   :  { %v646_v29 = vpop.f32.mrf.mxu3 }
 0x621   :  { %v647_v30 = vadd.f32 %v833_v28, %v646_v29 }
 0x623   :  { %v650_v31 = vadd.f32 %v647_v30, %v529_v14 }
 0x625   :  { %v653_v32 = vsel %vm89_vm0, %v650_v31, 0.0 }
 0x626   :  { %654 = vadd.xlane.f32.xlu1 %v653_v32 }
 0x628   :  { %v648_v33 = vpop.f32.mrf.mxu3 }
 0x699   :  { %v655_v34 = vpop.xlane.xlu1 %654 }
 0x69a   :  { %v656_v35 = vmul.f32 %v655_v34, %v1093_v49 }
 0x69c   :  { %v657_v36 = vsub.f32 %v650_v31, %v656_v35 }
 0x69e   :  { %v658_v37 = vmul.f32 %v657_v36, %v657_v36 }
 0x6a0   :  { %v659_v18 = vsel %vm89_vm0, %v658_v37, 0.0 }
 0x6a1   :  { %660 = vadd.xlane.f32.xlu1 %v659_v18 }
 0x714   :  { %v661_v38 = vpop.xlane.xlu1 %660 }
 0x715   :  { %v662_v13 = vmul.f32 %v661_v38, %v1093_v49 }
 0x717   :  { %v663_v39 = vadd.f32 1e-05, %v662_v13 }
 0x719   :  { %848 = vrsqrt.f32 %v663_v39  ;;  %vm670_vm12 = vweird.f32 %v663_v39 }
 0x71f   :  { %v849_v25 = vpop.eup %848 }
 0x720   :  { %v665_v40 = vmul.f32 %v849_v25, %v663_v39  ;;  %vm671_vm11 = vweird.f32 %v849_v25 }
 0x721   :  { %vm672_vm13 = vmor %vm670_vm12, %vm671_vm11 }
 0x722   :  { %v666_v15 = vmul.f32 %v849_v25, %v665_v40 }
 0x724   :  { %v667_v22 = vmul.f32 0.5, %v666_v15 }
 0x726   :  { %v668_v41 = vsub.f32 1.5, %v667_v22 }
 0x728   :  { %v669_v42 = vmul.f32 %v849_v25, %v668_v41 }
 0x72a   :  { %v673_v44 = vsel %vm672_vm13, %v849_v25, %v669_v42 }
 0x72b   :  { %v674_v45 = vmul.f32 %v673_v44, %v657_v36 }
 0x72d   :  { %v678_v47 = vmul.f32 %v834_v43, %v674_v45 }
 0x72f   :  { %v682_v48 = vadd.f32 %v835_v46, %v678_v47 }
 0x731   :  { %683 = vst.msk [vmem:[#allocation2] sm:$0xff] %vm89_vm0, %v682_v48 }
 0x732   :  { %694 = dma.vmem_to_hbm [thread:$0]  %s690_s26, 128, %s692_s4, [#allocation3]  }
 0x733   :  { %874 = dma.done.wait [#allocation3], 128  }
 0x734   :  { %875 = vsyncadd [#allocation3], 4294967168 }
 0x735   :  { %699 = vsyncpa [#allocation3], 1 }

</bundles_post_ra>
